<compile_context>
chip_gen: v7x
topology: tpu7x:2x2x1
jax: 0.10.0
libtpu: 0.0.40
codegen_flags: <defaults>
</compile_context>

<pallas_src>
import math

import jax
import jax.numpy as jnp
from jax.experimental import pallas as pl
from jax.experimental.pallas import tpu as pltpu

_LANE = 128
_SUBLANE = 8


def _round_up(x, m):
    return ((x + m - 1) // m) * m


def _duration_embedder_kernel(min_value, max_value, use_bf16_matmul):
    inv_range = 1.0 / float(max_value - min_value)

    def kernel(f_ref, pw_ref, ph_ref, w_ref, wt_ref, b_ref, o_ref):
        # clamp + normalize (VPU)
        t = jnp.clip(f_ref[...], min_value, max_value)        # (tm, 1)
        t = (t - min_value) * inv_range                       # (tm, 1)

        # Merged Fourier features: sin over the first half, cos over the
        # second half via cos(x) = sin(x + pi/2); 2*pi is pre-baked into pw.
        freqs = t * pw_ref[...] + ph_ref[...]                 # (tm, K)
        feats = jnp.sin(freqs)                                # EUP
        if use_bf16_matmul:
            feats = feats.astype(jnp.bfloat16)

        # Single MXU matmul over the concatenated [sin | cos] features.
        out = jnp.dot(feats, w_ref[...],
                      preferred_element_type=jnp.float32)     # (tm, Dp)

        # One fused VPU pass for the `times` column and the bias.
        o_ref[...] = out + t * wt_ref[...] + b_ref[...]

    return kernel


def _prepare_params(params, use_bf16_matmul):
    """Merge / pad the canonical params into the kernel layout."""
    pos_w = params["pos_weights"].astype(jnp.float32)   # (1, half)
    w_t = params["w_times"].astype(jnp.float32)         # (1, D)
    w_s = params["w_sin"].astype(jnp.float32)           # (half, D)
    w_c = params["w_cos"].astype(jnp.float32)           # (half, D)
    bias = params["bias"].astype(jnp.float32)           # (1, D)

    half = pos_w.shape[-1]
    D = bias.shape[-1]
    K = 2 * half
    Dp = _round_up(D, _LANE)

    pw2 = jnp.concatenate([pos_w, pos_w], axis=-1) * (2.0 * math.pi)   # (1, K)
    phase = jnp.concatenate(
        [jnp.zeros((1, half), jnp.float32),
         jnp.full((1, half), math.pi / 2.0, jnp.float32)], axis=-1)    # (1, K)
    w_full = jnp.concatenate([w_s, w_c], axis=0)                       # (K, D)

    pad = Dp - D
    if pad:
        w_full = jnp.pad(w_full, ((0, 0), (0, pad)))
        w_t = jnp.pad(w_t, ((0, 0), (0, pad)))
        bias = jnp.pad(bias, ((0, 0), (0, pad)))

    if use_bf16_matmul:
        w_full = w_full.astype(jnp.bfloat16)

    return pw2, phase, w_full, w_t, bias, D, Dp, K


def duration_embedder(floats, params, *, min_value, max_value,
                      use_bf16_matmul=False, block_m=256):
    """floats: (B,) f32. Returns (B, 1, number_embedding_dim) f32."""
    pw2, phase, w_full, w_t, bias, D, Dp, K = _prepare_params(
        params, use_bf16_matmul)

    B = floats.shape[0]
    tm = min(int(block_m), _round_up(B, _SUBLANE))
    Bp = _round_up(B, tm)

    f2d = floats.reshape(B, 1).astype(jnp.float32)
    if Bp != B:
        f2d = jnp.pad(f2d, ((0, Bp - B), (0, 0)))

    out = pl.pallas_call(
        _duration_embedder_kernel(min_value, max_value, use_bf16_matmul),
        out_shape=jax.ShapeDtypeStruct((Bp, Dp), jnp.float32),
        grid_spec=pl.GridSpec(
            grid=(Bp // tm,),
            in_specs=[
                pl.BlockSpec((tm, 1), lambda i: (i, 0)),     # durations
                pl.BlockSpec((1, K), lambda i: (0, 0)),      # [w,w]*2pi (resident)
                pl.BlockSpec((1, K), lambda i: (0, 0)),      # phase     (resident)
                pl.BlockSpec((K, Dp), lambda i: (0, 0)),     # [Wsin;Wcos](resident)
                pl.BlockSpec((1, Dp), lambda i: (0, 0)),     # times weight row
                pl.BlockSpec((1, Dp), lambda i: (0, 0)),     # bias
            ],
            out_specs=pl.BlockSpec((tm, Dp), lambda i: (i, 0)),
        ),
        compiler_params=pltpu.CompilerParams(
            dimension_semantics=("parallel",)),
    )(f2d, pw2, phase, w_full, w_t, bias)

    # slice off batch/feature padding; match torch's .view(-1, 1, D)
    return out[:B, :D].reshape(B, 1, D)


def init_params(key, number_embedding_dim, internal_dim):
    assert internal_dim % 2 == 0
    half = internal_dim // 2
    k0, k1, k2 = jax.random.split(key, 3)

    # StableAudioPositionalEmbedding.weights ~ randn(half)
    pos_weights = jax.random.normal(k0, (1, half), dtype=jnp.float32)

    # nn.Linear(internal_dim + 1, number_embedding_dim): weight (D, in), bias (D,)
    in_features = internal_dim + 1
    bound = 1.0 / math.sqrt(in_features)
    lin_w = jax.random.uniform(k1, (number_embedding_dim, in_features),
                               minval=-bound, maxval=bound, dtype=jnp.float32)
    lin_b = jax.random.uniform(k2, (number_embedding_dim,),
                               minval=-bound, maxval=bound, dtype=jnp.float32)

    # Feature order in the reference concat is [times (1), sin (half), cos (half)].
    w_t = lin_w.T                                  # (in, D)
    return {
        "pos_weights": pos_weights,                # (1, half)
        "w_times": w_t[0:1, :],                    # (1, D)
        "w_sin": w_t[1:1 + half, :],               # (half, D)
        "w_cos": w_t[1 + half:, :],                # (half, D)
        "bias": lin_b.reshape(1, number_embedding_dim),
    }


def reference(floats, params, *, min_value, max_value):
    """Pure-JAX replica of the PyTorch forward (for verification)."""
    t = jnp.clip(floats, min_value, max_value)
    t = (t - min_value) / (max_value - min_value)
    t = t.astype(jnp.float32)[..., None]                         # (B, 1)
    freqs = t * params["pos_weights"] * 2.0 * math.pi            # (B, half)
    feat = jnp.concatenate([t, jnp.sin(freqs), jnp.cos(freqs)], axis=-1)
    w_full = jnp.concatenate([params["w_times"], params["w_sin"],
                              params["w_cos"]], axis=0)          # (in, D)
    out = feat @ w_full + params["bias"]
    return out.reshape(-1, 1, params["bias"].shape[-1])


if __name__ == "__main__":
    B = 8
    number_embedding_dim = 32
    internal_dim = 64          # small, must be even
    min_value, max_value = 0.0, 30.0

    key = jax.random.PRNGKey(0)
    kp, kx = jax.random.split(key)
    params = init_params(kp, number_embedding_dim, internal_dim)

    # durations in seconds, some outside [min, max] to exercise the clamp
    floats = jax.random.uniform(kx, (B,), minval=-5.0, maxval=40.0,
                                dtype=jnp.float32)

    out = duration_embedder(floats, params,
                            min_value=min_value, max_value=max_value)
    out = jax.block_until_ready(out)

    ref = reference(floats, params, min_value=min_value, max_value=max_value)
    assert out.shape == (B, 1, number_embedding_dim)
    # Slightly looser than before: constant folding (2*pi into weights) and
    # cos(x)=sin(x+pi/2) change rounding at the ~1e-6 level, still f32-exact
    # in any practical sense.
    assert jnp.allclose(out, ref, atol=2e-5, rtol=2e-5), (
        float(jnp.max(jnp.abs(out - ref))))

    print("KERNEL_OK")
</pallas_src>

<mosaic_0001>
module attributes {stable_mosaic.version = 11 : i64} {
  func.func @kernel(%arg0: i32, %arg1: memref<8x1xf32, #tpu.memory_space<vmem>>, %arg2: memref<1x64xf32, #tpu.memory_space<vmem>>, %arg3: memref<1x64xf32, #tpu.memory_space<vmem>>, %arg4: memref<64x128xf32, #tpu.memory_space<vmem>>, %arg5: memref<1x128xf32, #tpu.memory_space<vmem>>, %arg6: memref<1x128xf32, #tpu.memory_space<vmem>>, %arg7: memref<8x128xf32, #tpu.memory_space<vmem>>) attributes {dimension_semantics = [#tpu.dimension_semantics<parallel>], iteration_bounds = array<i64: 1>, scalar_prefetch = 0 : i64, scratch_operands = 0 : i64, tpu.core_type = #tpu.core_type<tc>, window_params = [{transform_indices = @transform_0, window_bounds = array<i64: 8, 1>}, {pipeline_mode = #tpu.pipeline_mode<synchronous>, transform_indices = @transform_1, window_bounds = array<i64: 1, 64>}, {pipeline_mode = #tpu.pipeline_mode<synchronous>, transform_indices = @transform_2, window_bounds = array<i64: 1, 64>}, {pipeline_mode = #tpu.pipeline_mode<synchronous>, transform_indices = @transform_3, window_bounds = array<i64: 64, 128>}, {pipeline_mode = #tpu.pipeline_mode<synchronous>, transform_indices = @transform_4, window_bounds = array<i64: 1, 128>}, {pipeline_mode = #tpu.pipeline_mode<synchronous>, transform_indices = @transform_5, window_bounds = array<i64: 1, 128>}, {transform_indices = @transform_6, window_bounds = array<i64: 8, 128>}]} {
    %c0 = arith.constant 0 : index
    %c0_0 = arith.constant 0 : index
    %0 = vector.load %arg1[%c0, %c0_0] : memref<8x1xf32, #tpu.memory_space<vmem>>, vector<8x1xf32>
    %cst = arith.constant 0.000000e+00 : f32
    %cst_1 = arith.constant 3.000000e+01 : f32
    %1 = vector.broadcast %cst : f32 to vector<8x1xf32>
    %2 = arith.maximumf %1, %0 : vector<8x1xf32>
    %3 = vector.broadcast %cst_1 : f32 to vector<8x1xf32>
    %4 = arith.minimumf %3, %2 : vector<8x1xf32>
    %cst_2 = arith.constant 0.000000e+00 : f32
    %5 = vector.broadcast %cst_2 : f32 to vector<8x1xf32>
    %6 = arith.subf %4, %5 : vector<8x1xf32>
    %cst_3 = arith.constant 0.0333333351 : f32
    %7 = vector.broadcast %cst_3 : f32 to vector<8x1xf32>
    %8 = arith.mulf %6, %7 : vector<8x1xf32>
    %c0_4 = arith.constant 0 : index
    %c0_5 = arith.constant 0 : index
    %9 = vector.load %arg2[%c0_4, %c0_5] : memref<1x64xf32, #tpu.memory_space<vmem>>, vector<1x64xf32>
    %10 = vector.broadcast %8 : vector<8x1xf32> to vector<8x64xf32>
    %11 = vector.broadcast %9 : vector<1x64xf32> to vector<8x64xf32>
    %12 = arith.mulf %10, %11 : vector<8x64xf32>
    %c0_6 = arith.constant 0 : index
    %c0_7 = arith.constant 0 : index
    %13 = vector.load %arg3[%c0_6, %c0_7] : memref<1x64xf32, #tpu.memory_space<vmem>>, vector<1x64xf32>
    %14 = vector.broadcast %13 : vector<1x64xf32> to vector<8x64xf32>
    %15 = arith.addf %12, %14 : vector<8x64xf32>
    %16 = math.sin %15 : vector<8x64xf32>
    %c0_8 = arith.constant 0 : index
    %c0_9 = arith.constant 0 : index
    %17 = vector.load %arg4[%c0_8, %c0_9] : memref<64x128xf32, #tpu.memory_space<vmem>>, vector<64x128xf32>
    %cst_10 = arith.constant dense<0.000000e+00> : vector<8x128xf32>
    %18 = tpu.matmul %16, %17, %cst_10 {dimension_numbers = #tpu.dot_dimension_numbers<[1], [0], [0], [1], [0, 0, 1, 1], [], []>} : vector<8x64xf32>, vector<64x128xf32>, vector<8x128xf32> -> vector<8x128xf32>
    %c0_11 = arith.constant 0 : index
    %c0_12 = arith.constant 0 : index
    %19 = vector.load %arg5[%c0_11, %c0_12] : memref<1x128xf32, #tpu.memory_space<vmem>>, vector<1x128xf32>
    %20 = vector.broadcast %8 : vector<8x1xf32> to vector<8x128xf32>
    %21 = vector.broadcast %19 : vector<1x128xf32> to vector<8x128xf32>
    %22 = arith.mulf %20, %21 : vector<8x128xf32>
    %23 = arith.addf %18, %22 : vector<8x128xf32>
    %c0_13 = arith.constant 0 : index
    %c0_14 = arith.constant 0 : index
    %24 = vector.load %arg6[%c0_13, %c0_14] : memref<1x128xf32, #tpu.memory_space<vmem>>, vector<1x128xf32>
    %25 = vector.broadcast %24 : vector<1x128xf32> to vector<8x128xf32>
    %26 = arith.addf %23, %25 : vector<8x128xf32>
    %c0_15 = arith.constant 0 : index
    %c0_16 = arith.constant 0 : index
    %27 = vector.load %arg7[%c0_15, %c0_16] : memref<8x128xf32, #tpu.memory_space<vmem>>, vector<8x128xf32>
    tpu.vector_store %arg7[%c0_15, %c0_16], %26 {strides = array<i32>} : memref<8x128xf32, #tpu.memory_space<vmem>>, vector<8x128xf32>,
    return
  }
  func.func @transform_0(%arg0: i32) -> (i32, i32) {
    %c0_i32 = arith.constant 0 : i32
    %c0_i32_0 = arith.constant 0 : i32
    return %arg0, %c0_i32 : i32, i32
  }
  func.func @transform_1(%arg0: i32) -> (i32, i32) {
    %c0_i32 = arith.constant 0 : i32
    %c0_i32_0 = arith.constant 0 : i32
    %c0_i32_1 = arith.constant 0 : i32
    return %c0_i32, %c0_i32_0 : i32, i32
  }
  func.func @transform_2(%arg0: i32) -> (i32, i32) {
    %c0_i32 = arith.constant 0 : i32
    %c0_i32_0 = arith.constant 0 : i32
    %c0_i32_1 = arith.constant 0 : i32
    return %c0_i32, %c0_i32_0 : i32, i32
  }
  func.func @transform_3(%arg0: i32) -> (i32, i32) {
    %c0_i32 = arith.constant 0 : i32
    %c0_i32_0 = arith.constant 0 : i32
    %c0_i32_1 = arith.constant 0 : i32
    return %c0_i32, %c0_i32_0 : i32, i32
  }
  func.func @transform_4(%arg0: i32) -> (i32, i32) {
    %c0_i32 = arith.constant 0 : i32
    %c0_i32_0 = arith.constant 0 : i32
    %c0_i32_1 = arith.constant 0 : i32
    return %c0_i32, %c0_i32_0 : i32, i32
  }
  func.func @transform_5(%arg0: i32) -> (i32, i32) {
    %c0_i32 = arith.constant 0 : i32
    %c0_i32_0 = arith.constant 0 : i32
    %c0_i32_1 = arith.constant 0 : i32
    return %c0_i32, %c0_i32_0 : i32, i32
  }
  func.func @transform_6(%arg0: i32) -> (i32, i32) {
    %c0_i32 = arith.constant 0 : i32
    %c0_i32_0 = arith.constant 0 : i32
    return %arg0, %c0_i32 : i32, i32
  }
}

</mosaic_0001>

<bundles_post_ra>
// kernel: tpu_custom_call.1
= control target key start
LH: loop header
LB: loop body
LE: loop exit
PB: predicated region body
PF: predicated region fallthrough
CT: control target
= control target key end

     0   :  { %11 = vsyncpa [#allocation3], 0  ;;  %s514_s0 = inlined_call_operand.vmem [shape: f32[8,1], index: 0, kind: input, shape index: {}]   ;;  %s515_s1 = inlined_call_operand.vmem [shape: f32[1,64], index: 1, kind: input, shape index: {}]   ;;  %s516_s2 = inlined_call_operand.vmem [shape: f32[1,64], index: 2, kind: input, shape index: {}]   ;;  %s517_s3 = inlined_call_operand.hbm [shape: f32[64,128], index: 3, kind: input, shape index: {}]   ;;  %s518_s4 = inlined_call_operand.vmem [shape: f32[1,128], index: 4, kind: input, shape index: {}]   ;;  %s519_s5 = inlined_call_operand.vmem [shape: f32[1,128], index: 5, kind: input, shape index: {}]   ;;  %s520_s6 = inlined_call_operand.hbm [shape: f32[8,128], index: 6, kind: output, shape index: {}]  }
   0x1   :  { %12 = vsyncpa [#allocation4], 0  ;;  %s401_s21 = smov [#allocation2]   ;;  %s353_s25 = scalar_lea.hbm %s517_s3, 1024 }
   0x2   :  { %s24_s22 = sshll.u32 %s401_s21, 4  ;;  %p354_p0 = scmp.ne.s32.totalorder %s517_s3, %s353_s25  ;;  %s25_s22 = int_to_ptr.vmem [resolvable:$true] %s24_s22 }
   0x3   :  { %p357_p1 = scmp.lt.u32.totalorder %s353_s25, %s517_s3 }
   0x5   :  { %p359_p2 = pnand %p357_p1, %p354_p0 }
   0x7   :  { %362 = shalt.err (!%p359_p2)
}
   0x8   :  { %s363_s30 = scalar_lea.vmem %s25_s22, 1024  ;;  %p368_p4 = scmp.lt.s32.totalorder %s25_s22, %s25_s22 }
   0x9   :  { %p364_p3 = scmp.ne.s32.totalorder %s25_s22, %s363_s30  ;;  %p369_p5 = scmp.lt.s32.totalorder %s363_s30, %s363_s30 }
   0xb   :  { %p370_p6 = por %p369_p5, %p368_p4 }
   0xd   :  { %p371_p7 = pnand %p370_p6, %p364_p3 }
   0xf   :  { %374 = shalt.err (!%p371_p7)
}
  0x10   :  { %s402_s7 = smov 128   ;;  %s403_s8 = smov 8  }
  0x11   :  { %30 = dma.hbm_to_vmem [thread:$0]  %s517_s3, 1024, %s25_s22, [#allocation3], %s402_s7, %s402_s7, %s403_s8  }
  0x12   :  { %397 = dma.done.wait [#allocation3], 1024  }
  0x13   :  { %398 = vsyncadd [#allocation3], 4294966272  ;;  %v404_v0 = vmov 0   ;;  %v38_v1 = vld [vmem:[%s514_s0] sm:$0xff]  ;;  %v168_v6 = vld [vmem:[#allocation2 + $0x8] sm:$0xff]  ;;  %v405_v8 = vmov 0.0|0.0  }
  0x14   :  { %348 = vset.pattern.permute.xlu0 %v404_v0  ;;  %v39_v2 = vmax.f32 %v38_v1, 0.0  ;;  %v167_v5 = vld [vmem:[#allocation2] sm:$0xff]  ;;  %v169_v7 = vld [vmem:[#allocation2 + $0x10] sm:$0xff]  ;;  %318 = vmatprep.subr.bf16.mxu0 %v405_v8  ;;  %v170_v10 = vld [vmem:[#allocation2 + $0x18] sm:$0xff]  ;;  %vm406_vm0 = vmmov 0   ;;  %v407_v11 = vmov 0.0  }
  0x15   :  { %v319_v9 = vpack.c.bf16 %v168_v6, %v167_v5  ;;  %315 = vmatprep.mubr.msk.f32.mxu0 %vm406_vm0, %v407_v11  ;;  %v322_v12 = vpack.c.bf16 %v170_v10, %v169_v7  ;;  %v171_v13 = vld [vmem:[#allocation2 + $0x20] sm:$0xff]  ;;  %v172_v14 = vld [vmem:[#allocation2 + $0x28] sm:$0xff]  ;;  %v173_v16 = vld [vmem:[#allocation2 + $0x30] sm:$0xff]  ;;  %v408_v35 = vmov 2102212464   ;;  %vm183_vm13 = vcmask 523264  }
  0x16   :  { %v40_v3 = vmin.f32 %v39_v2, 30.0  ;;  %v325_v15 = vpack.c.bf16 %v172_v14, %v171_v13  ;;  %v174_v17 = vld [vmem:[#allocation2 + $0x38] sm:$0xff]  ;;  %v281_v19 = vld [vmem:[%s515_s1] ss:$0 sm:$0xff]  ;;  %v409_v37 = vmov 920167782  }
  0x17   :  { %320 = vmatpush3.bf16.msra.mxu0 %v319_v9  ;;  %v328_v18 = vpack.c.bf16 %v174_v17, %v173_v16  ;;  %v282_v20 = vld [vmem:[%s516_s2] ss:$0 sm:$0xff]  ;;  %v410_v41 = vmov 1326507024   ;;  %v411_v43 = vmov 683565275  }
  0x18   :  { %v41_v4 = vmul.f32 0.033333335, %v40_v3  ;;  %321 = vmatprep.subr.bf16.mxu0 %v405_v8  ;;  %v412_v45 = vmov 2475754826   ;;  %v413_v48 = vmov 2131351028  }
  0x19   :  { %s414_s17 = smov [#allocation5]  }
  0x1a   :  { %45 = vperm.xlu0 %348, %v41_v4   ;;  %s272_s18 = sshll.u32 %s414_s17, 4  ;;  %s273_s18 = int_to_ptr.vmem [resolvable:$true] %s272_s18 }
  0x1b   :  { %323 = vmatpush3.bf16.msra.mxu0 %v322_v12  ;;  %s375_s19 = scalar_lea.vmem %s273_s18, 128  ;;  %p380_p9 = scmp.lt.s32.totalorder %s273_s18, %s273_s18 }
  0x1c   :  { %324 = vmatprep.subr.bf16.mxu0 %v405_v8  ;;  %p376_p8 = scmp.ne.s32.totalorder %s273_s18, %s375_s19  ;;  %p381_p10 = scmp.lt.s32.totalorder %s375_s19, %s375_s19 }
  0x1e   :  { %p382_p11 = por %p381_p10, %p380_p9 }
  0x1f   :  { %326 = vmatpush3.bf16.msra.mxu0 %v325_v15 }
  0x20   :  { %327 = vmatprep.subr.bf16.mxu0 %v405_v8  ;;  %p383_p12 = pnand %p382_p11, %p376_p8 }
  0x23   :  { %329 = vmatpush3.bf16.msra.mxu0 %v328_v18 }
  0x99   :  { %v471_v21 = vpop.permute.xlu0 %45 }
  0x9a   :  { %v54_v22 = vmul.f32 %v281_v19, %v471_v21 }
  0x9c   :  { %v474_v23 = vadd.f32 %v282_v20, %v54_v22 }
  0x9e   :  { %v66_v24 = vand.u32 2139095040, %v474_v23  ;;  %v63_v25 = vand.u32 2147483647, %v474_v23  ;;  %vm65_vm8 = vcmp.lt.s32.totalorder %v474_v23, 0  ;;  %vm155_vm14 = vweird.f32 %v474_v23 }
  0xa0   :  { %v67_v26 = vshrl.u32 %v66_v24, 23  ;;  %v70_v28 = vand.u32 8388607, %v63_v25  ;;  %vm64_vm9 = vcmp.le.f32.partialorder %v63_v25, 0.7853982 }
  0xa2   :  { %v283_v27 = vadd.s32 4294967169, %v67_v26  ;;  %v71_v31 = vor.u32 8388608, %v70_v28 }
  0xa4   :  { %v73_v29 = vadd.s32 1, %v283_v27  ;;  %v111_v39 = vshll.u32 %v71_v31, 8 }
  0xa6   :  { %vm74_vm1 = vcmp.gt.s32.totalorder %v73_v29, 0 }
  0xa7   :  { %v75_v30 = vsel %vm74_vm1, %v73_v29, 0 }
  0xa8   :  { %v77_v32 = vand.u32 31, %v75_v30  ;;  %v76_v33 = vshrl.u32 %v75_v30, 5 }
  0xaa   :  { %v78_v34 = vsub.s32 32, %v77_v32  ;;  %v89_v36 = vshll.u32 %v408_v35, %v77_v32  ;;  %v92_v38 = vshll.u32 %v409_v37, %v77_v32  ;;  %v80_v44 = vshll.u32 %v411_v43, %v77_v32 }
  0xab   :  { %v83_v47 = vshll.u32 %v412_v45, %v77_v32  ;;  %v86_v50 = vshll.u32 %v413_v48, %v77_v32  ;;  %vm98_vm2 = vcmp.lt.s32.totalorder %v76_v33, 4  ;;  %vm95_vm3 = vcmp.lt.s32.totalorder %v76_v33, 1 }
  0xac   :  { %v90_v40 = vshrl.u32 %v409_v37, %v78_v34  ;;  %v93_v42 = vshrl.u32 %v410_v41, %v78_v34  ;;  %v81_v46 = vshrl.u32 %v412_v45, %v78_v34  ;;  %v84_v49 = vshrl.u32 %v413_v48, %v78_v34 }
  0xad   :  { %v87_v51 = vshrl.u32 %v408_v35, %v78_v34  ;;  %v79_v55 = vshrl.u32 %v411_v43, %v78_v34  ;;  %vm96_vm4 = vcmp.lt.s32.totalorder %v76_v33, 2  ;;  %vm97_vm5 = vcmp.lt.s32.totalorder %v76_v33, 3 }
  0xae   :  { %v91_v52 = vor.u32 %v90_v40, %v89_v36  ;;  %v94_v53 = vor.u32 %v93_v42, %v92_v38  ;;  %v82_v54 = vor.u32 %v81_v46, %v80_v44  ;;  %v85_v56 = vor.u32 %v84_v49, %v83_v47 }
  0xaf   :  { %v88_v57 = vor.u32 %v87_v51, %v86_v50 }
  0xb0   :  { %v104_v58 = vsel %vm98_vm2, %v91_v52, 920167782  ;;  %v108_v59 = vsel %vm98_vm2, %v94_v53, 1326507024  ;;  %v103_v61 = vsel %vm95_vm3, %v82_v54, %v85_v56  ;;  %v99_v0 = vsel %vm95_vm3, %v79_v55, %v82_v54  ;;  %v287_v53 = vld [vmem:[%s518_s4] ss:$0 sm:$0xff] }
  0xb1   :  { %v100_v60 = vsel %vm98_vm2, %v88_v57, 2102212464  ;;  %v105_v62 = vsel %vm97_vm5, %v88_v57, %v104_v58  ;;  %v107_v63 = vsel %vm95_vm3, %v85_v56, %v88_v57  ;;  %v109_v3 = vsel %vm97_vm5, %v91_v52, %v108_v59 }
  0xb2   :  { %v101_v1 = vsel %vm97_vm5, %v85_v56, %v100_v60  ;;  %v106_v2 = vsel %vm96_vm4, %v103_v61, %v105_v62  ;;  %v110_v4 = vsel %vm96_vm4, %v107_v63, %v109_v3  ;;  %v182_v54 = vmul.f32 %v287_v53, %v471_v21  ;;  %v289_v56 = vld [vmem:[%s519_s5] ss:$0 sm:$0xff] }
  0xb3   :  { %v480_v5 = vmul.u32.u64.low %v111_v39, %v106_v2  ;;  %v481_v6 = vmul.u32.u64.high %v111_v39, %v106_v2, %v480_v5  ;;  %v483_v7 = vmul.u32.u64.low %v111_v39, %v110_v4  ;;  %v484_v8 = vmul.u32.u64.high %v111_v39, %v110_v4, %v483_v7 }
  0xb4   :  { %v102_v9 = vsel %vm96_vm4, %v99_v0, %v101_v1 }
  0xb5   :  { %v121_v10 = vadd.s32 1, %v481_v6  ;;  %v118_v11 = vmul.u32 %v111_v39, %v102_v9  ;;  %vm120_vm6 = vc.u32 %v484_v8, %v480_v5  ;;  %v119_v26 = vadd.s32 %v480_v5, %v484_v8 }
  0xb7   :  { %v122_v12 = vsel %vm120_vm6, %v121_v10, %v481_v6 }
  0xb8   :  { %v123_v13 = vadd.s32 %v122_v12, %v118_v11 }
  0xba   :  { %v124_v14 = vadd.s32 536870912, %v123_v13 }
  0xbc   :  { %v125_v15 = vshrl.u32 %v124_v14, 30 }
  0xbe   :  { %v126_v16 = vshll.u32 %v125_v15, 30  ;;  %v149_v38 = vsub.s32 4, %v125_v15 }
  0xc0   :  { %v127_v17 = vsub.s32 %v123_v13, %v126_v16  ;;  %v150_v41 = vsel %vm65_vm8, %v149_v38, %v125_v15 }
  0xc1   :  { %v152_v43 = vsel %vm64_vm9, 0, %v150_v41 }
  0xc2   :  { %v129_v18 = vsub.s32 0, %v127_v17  ;;  %v156_v44 = vadd.s32 3, %v152_v43 }
  0xc4   :  { %v284_v19 = vmin.u32 %v129_v18, %v127_v17  ;;  %v157_v45 = vand.u32 3, %v156_v44 }
  0xc6   :  { %v131_v20 = vclz %v284_v19  ;;  %vm162_vm10 = vcmp.eq.s32.totalorder %v157_v45, 2  ;;  %vm159_vm11 = vcmp.eq.s32.totalorder %v157_v45, 0  ;;  %vm158_vm12 = vcmp.lt.s32.totalorder %v157_v45, 2 }
  0xc8   :  { %v285_v22 = vadd.s32 4294967294, %v131_v20 }
  0xca   :  { %vm286_vm7 = vcmp.lt.s32.totalorder %v285_v22, 0 }
  0xcb   :  { %v134_v24 = vsel %vm286_vm7, 0, %v285_v22 }
  0xcc   :  { %v135_v27 = vsub.s32 32, %v134_v24  ;;  %v139_v28 = vsub.s32 4294967266, %v134_v24  ;;  %v136_v29 = vshll.u32 %v127_v17, %v134_v24 }
  0xce   :  { %v137_v30 = vshrl.u32 %v119_v26, %v135_v27  ;;  %v140_v31 = vadd.s32 127, %v139_v28 }
  0xd0   :  { %v138_v32 = vor.u32 %v137_v30, %v136_v29  ;;  %v141_v33 = vshll.u32 %v140_v31, 23 }
  0xd2   :  { %v142_v34 = vor.u32 4788187, %v141_v33  ;;  %v145_v36 = vcvt.s32.f32 %v138_v32 }
  0xd4   :  { %v143_v35 = vand.u32 2147483647, %v142_v34 }
  0xd6   :  { %v146_v37 = vmul.f32 %v145_v36, %v143_v35 }
  0xd8   :  { %v147_v39 = vxor.u32 2147483648, %v146_v37 }
  0xda   :  { %v148_v40 = vsel %vm65_vm8, %v147_v39, %v146_v37 }
  0xdb   :  { %v151_v42 = vsel %vm64_vm9, %v474_v23, %v148_v40 }
  0xdc   :  { %349 = vcosq.f32 %v151_v42 }
  0xdd   :  { %351 = vsinq.f32 %v151_v42 }
  0xe6   :  { %v350_v46 = vpop.eup %349 }
  0xe7   :  { %v352_v47 = vpop.eup %351  ;;  %v163_v48 = vxor.u32 2147483648, %v350_v46 }
  0xe8   :  { %v160_v49 = vxor.u32 2147483648, %v352_v47 }
  0xe9   :  { %v164_v50 = vsel %vm162_vm10, %v163_v48, %v352_v47 }
  0xea   :  { %v161_v51 = vsel %vm159_vm11, %v350_v46, %v160_v49 }
  0xeb   :  { %v165_v25 = vsel %vm158_vm12, %v161_v51, %v164_v50 }
  0xec   :  { %v166_v52 = vsel %vm155_vm14, nan, %v165_v25 }
  0xed   :  { %316 = vmatmul.mubr.msk.f32.vlgmr.msra.gmra.mrb[0].mxu0 %vm183_vm13, %v166_v52 }
 0x1c0   :  { %v253_v55 = vpop.f32.mrb[0].mxu0 }
 0x1c1   :  { %v254_v57 = vadd.f32 %v253_v55, %v182_v54  ;;  %v317_v58 = vpop.f32.mrb[1].mxu0 }
 0x1c3   :  { %v264_v59 = vadd.f32 %v289_v56, %v254_v57 }
 0x1c5   :  { %265 = vst [vmem:[#allocation5] sm:$0xff] %v264_v59 }
 0x1c6   :  { %386 = shalt.err (!%p383_p12)
}
 0x1c7   :  { %s387_s21 = scalar_lea.hbm %s520_s6, 128 }
 0x1c8   :  { %p388_p13 = scmp.ne.s32.totalorder %s520_s6, %s387_s21  ;;  %p391_p0 = scmp.lt.u32.totalorder %s387_s21, %s520_s6 }
 0x1ca   :  { %p393_p1 = pnand %p391_p0, %p388_p13 }
 0x1cc   :  { %396 = shalt.err (!%p393_p1)
}
 0x1cd   :  { %275 = dma.vmem_to_hbm [thread:$0]  %s273_s18, 128, %s520_s6, [#allocation4]  }
 0x1ce   :  { %399 = dma.done.wait [#allocation4], 128  }
 0x1cf   :  { %400 = vsyncadd [#allocation4], 4294967168 }
 0x1d0   :  { %279 = vsyncpa [#allocation3], 1 }
 0x1d1   :  { %280 = vsyncpa [#allocation4], 1 }

</bundles_post_ra>
